<compile_context>
chip_gen: v7x
topology: tpu7x:2x2x1
jax: 0.10.0
libtpu: 0.0.40
codegen_flags: <defaults>
</compile_context>

<pallas_src>
import functools

import jax
import jax.numpy as jnp
from jax.experimental import pallas as pl
from jax.experimental.pallas import tpu as pltpu


def _masked_avg_kernel(seq_len, x_ref, m_ref, inv_ref, o_ref, acc_ref):
    # x_ref:   (TB, TL, TD)  input tile
    # m_ref:   (TB, TL)      int8 mask tile, nonzero = PAD (excluded)
    # inv_ref: (TB, 1)       f32, 1 / (#valid tokens per row)
    # o_ref:   (TB, TD)      output tile (written on the last L step)
    # acc_ref: (TB, TD)      f32 accumulator (VMEM scratch)
    li = pl.program_id(2)
    tb, tl, td = x_ref.shape

    @pl.when(li == 0)
    def _():
        acc_ref[...] = jnp.zeros_like(acc_ref)

    # 2-D weight tile: sequence dim in lanes -> MXU-natural LHS layout, and
    # the mask stream in HBM is ~128x smaller than a (B, L, 1) weight array.
    w = 1.0 - m_ref[...].astype(jnp.float32)          # (TB, TL), 1.0 = keep

    ragged = seq_len % tl != 0
    if ragged:
        # Zero the padded tail of the edge block so garbage (even NaN/Inf)
        # never reaches the accumulator (w is finite, so zeroing x suffices).
        pos = li * tl + jax.lax.broadcasted_iota(jnp.int32, (tl, td), 0)
        keep = pos < seq_len

    # One (1, TL) @ (TL, TD) MXU matmul per batch row (TB <= 8, static
    # unroll): replaces the broadcast-multiply + cross-sublane reduce.
    for b in range(tb):
        xb = x_ref[b].astype(jnp.float32)             # (TL, TD)
        if ragged:
            xb = jnp.where(keep, xb, 0.0)
        acc_ref[b:b + 1, :] += jnp.dot(
            w[b:b + 1, :], xb, preferred_element_type=jnp.float32)

    @pl.when(li == pl.num_programs(2) - 1)
    def _():
        o_ref[...] = (acc_ref[...] * inv_ref[...]).astype(o_ref.dtype)


def _mean_kernel(seq_len, inv_len, x_ref, o_ref, acc_ref):
    # Specialized mask=None path: plain mean over the sequence axis.
    li = pl.program_id(2)
    tb, tl, td = x_ref.shape

    @pl.when(li == 0)
    def _():
        acc_ref[...] = jnp.zeros_like(acc_ref)

    ragged = seq_len % tl != 0
    if ragged:
        pos = li * tl + jax.lax.broadcasted_iota(jnp.int32, (tl, td), 0)
        keep = pos < seq_len

    for b in range(tb):
        xb = x_ref[b].astype(jnp.float32)             # (TL, TD)
        if ragged:
            xb = jnp.where(keep, xb, 0.0)
        acc_ref[b:b + 1, :] += jnp.sum(xb, axis=0, keepdims=True)

    @pl.when(li == pl.num_programs(2) - 1)
    def _():
        o_ref[...] = (acc_ref[...] * inv_len).astype(o_ref.dtype)


def _choose_tiles(B, L, D, itemsize, target_bytes=4 * 1024 * 1024):
    """Pick (TB, TD, TL).

    TB: batch rows per step (<= 8, or B).  TD: hidden tile (== D or a
    multiple of 128).  TL: sequence tile (== L or a multiple of 128, so both
    the 3-D x block and the 2-D mask block satisfy the (8,128) rule).
    """
    TB = B if B <= 8 else 8
    n_batch_blocks = -(-B // TB)
    min_tl = L if L < 128 else 128

    TD = D
    if D > 128:
        # Cap TD so one (TB, min_tl, TD) buffer stays within the budget ...
        cap = target_bytes // max(TB * min_tl * itemsize, 1)
        cap = max(128, (cap // 128) * 128)
        # ... and, with a single batch block, split D in two so a second
        # TensorCore (v7x) gets its own "parallel" grid blocks.
        if n_batch_blocks == 1 and D >= 256:
            half = -(-D // 2)
            cap = min(cap, (-(-half // 128)) * 128)
        TD = min(D, cap)

    per_l = max(TB * TD * itemsize, 1)
    tl = (target_bytes // per_l) // 128 * 128
    tl = max(128, min(tl, 4096))
    TL = L if tl >= L else tl
    return TB, TD, TL


def global_avg_1d(x, mask=None, *, block_l=None):
    """Pallas equivalent of GlobalAvg1D.forward.

    x:    (B, L, D) float array.
    mask: optional (B, L) bool array, True = padding position (excluded).
    Returns (B, D) in x.dtype.  A fully-masked row yields Inf/NaN, matching
    the PyTorch reference (division by a zero count).
    """
    B, L, D = x.shape
    itemsize = jnp.dtype(x.dtype).itemsize
    TB, TD, TL = _choose_tiles(B, L, D, itemsize)
    if block_l is not None:
        if block_l != L and block_l % 128 != 0:
            raise ValueError("block_l must equal L or be a multiple of 128")
        TL = block_l

    grid = (pl.cdiv(B, TB), pl.cdiv(D, TD), pl.cdiv(L, TL))
    compiler_params = pltpu.CompilerParams(
        dimension_semantics=("parallel", "parallel", "arbitrary"))
    out_shape = jax.ShapeDtypeStruct((B, D), x.dtype)
    x_spec = pl.BlockSpec((TB, TL, TD), lambda b, d, l: (b, l, d))
    out_spec = pl.BlockSpec((TB, TD), lambda b, d, l: (b, d))
    scratch = [pltpu.VMEM((TB, TD), jnp.float32)]

    if mask is None:
        kernel = functools.partial(_mean_kernel, L, float(1.0 / L))
        return pl.pallas_call(
            kernel,
            out_shape=out_shape,
            grid=grid,
            in_specs=[x_spec],
            out_specs=out_spec,
            scratch_shapes=scratch,
            compiler_params=compiler_params,
        )(x)

    # Tiny per-row 1/count in the wrapper; the mask itself streams to the
    # kernel as a 2-D (B, L) int8 array (no lane-padded weight tensor in HBM).
    valid = jnp.logical_not(mask)
    inv_cnt = 1.0 / jnp.sum(valid.astype(jnp.float32), axis=1, keepdims=True)
    m_i8 = mask.astype(jnp.int8)

    kernel = functools.partial(_masked_avg_kernel, L)
    return pl.pallas_call(
        kernel,
        out_shape=out_shape,
        grid=grid,
        in_specs=[
            x_spec,
            pl.BlockSpec((TB, TL), lambda b, d, l: (b, l)),
            pl.BlockSpec((TB, 1), lambda b, d, l: (b, 0)),
        ],
        out_specs=out_spec,
        scratch_shapes=scratch,
        compiler_params=compiler_params,
    )(x, m_i8, inv_cnt)


def _reference(x, mask=None):
    if mask is None:
        return x.mean(axis=1)
    w = jnp.logical_not(mask).astype(jnp.float32)[..., None]
    return (x * w).sum(axis=1) / w.sum(axis=1)


if __name__ == "__main__":
    key = jax.random.PRNGKey(0)
    k = jax.random.split(key, 6)

    # (1) Shape consistent with the module: (batch=2, seq=8, hidden=32).
    B, L, D = 2, 8, 32
    x = jax.random.normal(k[0], (B, L, D), dtype=jnp.float32)
    mask = jax.random.bernoulli(k[1], p=0.3, shape=(B, L))
    mask = mask.at[:, 0].set(False)  # at least one valid token per row

    out_masked = jax.block_until_ready(global_avg_1d(x, mask))
    out_mean = jax.block_until_ready(global_avg_1d(x))
    assert out_masked.shape == (B, D) and out_masked.dtype == x.dtype
    # Masked path uses the MXU (default matmul precision) -> small rounding
    # allowance; mean path is pure f32 adds -> tight tolerance.
    assert jnp.allclose(out_masked, _reference(x, mask), atol=5e-3, rtol=5e-3)
    assert jnp.allclose(out_mean, _reference(x), atol=1e-5, rtol=1e-5)

    # (2) Hidden dim >= 256: exercises the hidden-dim ("parallel") grid axis.
    B2, L2, D2 = 2, 16, 256
    x2 = jax.random.normal(k[2], (B2, L2, D2), dtype=jnp.float32)
    mask2 = jax.random.bernoulli(k[3], p=0.3, shape=(B2, L2))
    mask2 = mask2.at[:, 0].set(False)
    out2 = jax.block_until_ready(global_avg_1d(x2, mask2))
    out2m = jax.block_until_ready(global_avg_1d(x2))
    assert jnp.allclose(out2, _reference(x2, mask2), atol=5e-3, rtol=5e-3)
    assert jnp.allclose(out2m, _reference(x2), atol=1e-5, rtol=1e-5)

    # (3) Ragged sequence: force TL=128 < L=200 so the multi-step accumulator
    #     and the padded-tail guard are exercised.
    B3, L3, D3 = 3, 200, 32
    x3 = jax.random.normal(k[4], (B3, L3, D3), dtype=jnp.float32)
    mask3 = jax.random.bernoulli(k[5], p=0.3, shape=(B3, L3))
    mask3 = mask3.at[:, 0].set(False)
    out3 = jax.block_until_ready(global_avg_1d(x3, mask3, block_l=128))
    out3m = jax.block_until_ready(global_avg_1d(x3, block_l=128))
    assert jnp.allclose(out3, _reference(x3, mask3), atol=5e-3, rtol=5e-3)
    assert jnp.allclose(out3m, _reference(x3), atol=1e-5, rtol=1e-5)

    print("KERNEL_OK")
</pallas_src>

<mosaic_0001>
module attributes {stable_mosaic.version = 11 : i64} {
  func.func @_masked_avg_kernel(%arg0: i32, %arg1: i32, %arg2: i32, %arg3: memref<2x8x32xf32, #tpu.memory_space<vmem>>, %arg4: memref<2x8xi8, #tpu.memory_space<vmem>>, %arg5: memref<2x1xf32, #tpu.memory_space<vmem>>, %arg6: memref<2x32xf32, #tpu.memory_space<vmem>>, %arg7: memref<2x32xf32, #tpu.memory_space<vmem>>) attributes {dimension_semantics = [#tpu.dimension_semantics<parallel>, #tpu.dimension_semantics<parallel>, #tpu.dimension_semantics<arbitrary>], iteration_bounds = array<i64: 1, 1, 1>, scalar_prefetch = 0 : i64, scratch_operands = 1 : i64, tpu.core_type = #tpu.core_type<tc>, window_params = [{transform_indices = @transform_0, window_bounds = array<i64: 2, 8, 32>}, {transform_indices = @transform_1, window_bounds = array<i64: 2, 8>}, {transform_indices = @transform_2, window_bounds = array<i64: 2, 1>}, {transform_indices = @transform_3, window_bounds = array<i64: 2, 32>}]} {
    %c0_i32 = arith.constant 0 : i32
    %0 = arith.cmpi eq, %arg2, %c0_i32 : i32
    %1 = arith.extui %0 : i1 to i32
    %c0_i32_0 = arith.constant 0 : i32
    %2 = arith.cmpi ne, %1, %c0_i32_0 : i32
    scf.if %2 {
      %cst_19 = arith.constant 0.000000e+00 : f32
      %24 = vector.broadcast %cst_19 : f32 to vector<2x32xf32>
      %c0_20 = arith.constant 0 : index
      %c0_21 = arith.constant 0 : index
      %25 = vector.load %arg7[%c0_20, %c0_21] : memref<2x32xf32, #tpu.memory_space<vmem>>, vector<2x32xf32>
      tpu.vector_store %arg7[%c0_20, %c0_21], %24 {strides = array<i32>} : memref<2x32xf32, #tpu.memory_space<vmem>>, vector<2x32xf32>,
    } else {
    }
    %c0 = arith.constant 0 : index
    %c0_1 = arith.constant 0 : index
    %3 = vector.load %arg4[%c0, %c0_1] : memref<2x8xi8, #tpu.memory_space<vmem>>, vector<2x8xi8>
    %4 = arith.sitofp %3 : vector<2x8xi8> to vector<2x8xf32>
    %cst = arith.constant 1.000000e+00 : f32
    %5 = vector.broadcast %cst : f32 to vector<2x8xf32>
    %6 = arith.subf %5, %4 : vector<2x8xf32>
    %c0_2 = arith.constant 0 : index
    %c0_3 = arith.constant 0 : index
    %c0_4 = arith.constant 0 : index
    %7 = vector.load %arg3[%c0_2, %c0_3, %c0_4] : memref<2x8x32xf32, #tpu.memory_space<vmem>>, vector<1x8x32xf32>
    %8 = vector.shape_cast %7 : vector<1x8x32xf32> to vector<8x32xf32>
    %c0_5 = arith.constant 0 : index
    %c0_6 = arith.constant 0 : index
    %9 = vector.load %arg7[%c0_5, %c0_6] : memref<2x32xf32, #tpu.memory_space<vmem>>, vector<1x32xf32>
    %10 = vector.extract_strided_slice %6 {offsets = [0, 0], sizes = [1, 8], strides = [1, 1]} : vector<2x8xf32> to vector<1x8xf32>
    %cst_7 = arith.constant dense<0.000000e+00> : vector<1x32xf32>
    %11 = tpu.matmul %10, %8, %cst_7 {dimension_numbers = #tpu.dot_dimension_numbers<[1], [0], [0], [1], [0, 0, 1, 1], [], []>} : vector<1x8xf32>, vector<8x32xf32>, vector<1x32xf32> -> vector<1x32xf32>
    %12 = arith.addf %9, %11 : vector<1x32xf32>
    %c0_8 = arith.constant 0 : index
    %c0_9 = arith.constant 0 : index
    %13 = vector.load %arg7[%c0_8, %c0_9] : memref<2x32xf32, #tpu.memory_space<vmem>>, vector<1x32xf32>
    tpu.vector_store %arg7[%c0_8, %c0_9], %12 {strides = array<i32>} : memref<2x32xf32, #tpu.memory_space<vmem>>, vector<1x32xf32>,
    %c1 = arith.constant 1 : index
    %c0_10 = arith.constant 0 : index
    %c0_11 = arith.constant 0 : index
    %14 = vector.load %arg3[%c1, %c0_10, %c0_11] : memref<2x8x32xf32, #tpu.memory_space<vmem>>, vector<1x8x32xf32>
    %15 = vector.shape_cast %14 : vector<1x8x32xf32> to vector<8x32xf32>
    %c1_12 = arith.constant 1 : index
    %c0_13 = arith.constant 0 : index
    %16 = vector.load %arg7[%c1_12, %c0_13] : memref<2x32xf32, #tpu.memory_space<vmem>>, vector<1x32xf32>
    %17 = vector.extract_strided_slice %6 {offsets = [1, 0], sizes = [1, 8], strides = [1, 1]} : vector<2x8xf32> to vector<1x8xf32>
    %cst_14 = arith.constant dense<0.000000e+00> : vector<1x32xf32>
    %18 = tpu.matmul %17, %15, %cst_14 {dimension_numbers = #tpu.dot_dimension_numbers<[1], [0], [0], [1], [0, 0, 1, 1], [], []>} : vector<1x8xf32>, vector<8x32xf32>, vector<1x32xf32> -> vector<1x32xf32>
    %19 = arith.addf %16, %18 : vector<1x32xf32>
    %c1_15 = arith.constant 1 : index
    %c0_16 = arith.constant 0 : index
    %20 = vector.load %arg7[%c1_15, %c0_16] : memref<2x32xf32, #tpu.memory_space<vmem>>, vector<1x32xf32>
    tpu.vector_store %arg7[%c1_15, %c0_16], %19 {strides = array<i32>} : memref<2x32xf32, #tpu.memory_space<vmem>>, vector<1x32xf32>,
    %c0_i32_17 = arith.constant 0 : i32
    %21 = arith.cmpi eq, %arg2, %c0_i32_17 : i32
    %22 = arith.extui %21 : i1 to i32
    %c0_i32_18 = arith.constant 0 : i32
    %23 = arith.cmpi ne, %22, %c0_i32_18 : i32
    scf.if %23 {
      %c0_19 = arith.constant 0 : index
      %c0_20 = arith.constant 0 : index
      %24 = vector.load %arg7[%c0_19, %c0_20] : memref<2x32xf32, #tpu.memory_space<vmem>>, vector<2x32xf32>
      %c0_21 = arith.constant 0 : index
      %c0_22 = arith.constant 0 : index
      %25 = vector.load %arg5[%c0_21, %c0_22] : memref<2x1xf32, #tpu.memory_space<vmem>>, vector<2x1xf32>
      %26 = vector.broadcast %25 : vector<2x1xf32> to vector<2x32xf32>
      %27 = arith.mulf %24, %26 : vector<2x32xf32>
      %c0_23 = arith.constant 0 : index
      %c0_24 = arith.constant 0 : index
      %28 = vector.load %arg6[%c0_23, %c0_24] : memref<2x32xf32, #tpu.memory_space<vmem>>, vector<2x32xf32>
      tpu.vector_store %arg6[%c0_23, %c0_24], %27 {strides = array<i32>} : memref<2x32xf32, #tpu.memory_space<vmem>>, vector<2x32xf32>,
    } else {
    }
    return
  }
  func.func @transform_0(%arg0: i32, %arg1: i32, %arg2: i32) -> (i32, i32, i32) {
    %c0_i32 = arith.constant 0 : i32
    return %arg0, %arg2, %arg1 : i32, i32, i32
  }
  func.func @transform_1(%arg0: i32, %arg1: i32, %arg2: i32) -> (i32, i32) {
    %c0_i32 = arith.constant 0 : i32
    return %arg0, %arg2 : i32, i32
  }
  func.func @transform_2(%arg0: i32, %arg1: i32, %arg2: i32) -> (i32, i32) {
    %c0_i32 = arith.constant 0 : i32
    %c0_i32_0 = arith.constant 0 : i32
    return %arg0, %c0_i32 : i32, i32
  }
  func.func @transform_3(%arg0: i32, %arg1: i32, %arg2: i32) -> (i32, i32) {
    %c0_i32 = arith.constant 0 : i32
    return %arg0, %arg1 : i32, i32
  }
}

</mosaic_0001>

<bundles_post_ra>
// kernel: tpu_custom_call.1
= control target key start
LH: loop header
LB: loop body
LE: loop exit
PB: predicated region body
PF: predicated region fallthrough
CT: control target
= control target key end

     0   :  { %8 = vsyncpa [#allocation4], 0  ;;  %s358_s0 = inlined_call_operand.hbm [shape: f32[2,8,32], index: 0, kind: input, shape index: {}]   ;;  %s359_s1 = inlined_call_operand.vmem [shape: s8[2,8], index: 1, kind: input, shape index: {}]   ;;  %s360_s2 = inlined_call_operand.vmem [shape: f32[2,1], index: 2, kind: input, shape index: {}]   ;;  %s361_s3 = inlined_call_operand.hbm [shape: f32[2,32], index: 3, kind: output, shape index: {}]  }
   0x1   :  { %9 = vsyncpa [#allocation5], 0  ;;  %s299_s12 = smov [#allocation3]   ;;  %s251_s16 = scalar_lea.hbm %s358_s0, 256 }
   0x2   :  { %s15_s13 = sshll.u32 %s299_s12, 4  ;;  %p252_p0 = scmp.ne.s32.totalorder %s358_s0, %s251_s16  ;;  %s16_s13 = int_to_ptr.vmem [resolvable:$true] %s15_s13 }
   0x3   :  { %p255_p1 = scmp.lt.u32.totalorder %s251_s16, %s358_s0 }
   0x5   :  { %p257_p2 = pnand %p255_p1, %p252_p0 }
   0x7   :  { %260 = shalt.err (!%p257_p2)
}
   0x8   :  { %s261_s21 = scalar_lea.vmem %s16_s13, 256  ;;  %p266_p4 = scmp.lt.s32.totalorder %s16_s13, %s16_s13 }
   0x9   :  { %p262_p3 = scmp.ne.s32.totalorder %s16_s13, %s261_s21  ;;  %p267_p5 = scmp.lt.s32.totalorder %s261_s21, %s261_s21 }
   0xb   :  { %p268_p6 = por %p267_p5, %p266_p4 }
   0xd   :  { %p269_p7 = pnand %p268_p6, %p262_p3 }
   0xf   :  { %272 = shalt.err (!%p269_p7)
}
  0x10   :  { %s300_s22 = smov 128   ;;  %s301_s23 = smov 8  }
  0x11   :  { %21 = dma.hbm_to_vmem [thread:$0]  %s358_s0, 256, %s16_s13, [#allocation4], %s300_s22, %s300_s22, %s301_s23  }
  0x12   :  { %295 = dma.done.wait [#allocation4], 256  }
  0x13   :  { %296 = vsyncadd [#allocation4], 4294967040  ;;  %v302_v0 = vmov 0.0   ;;  %vm303_vm0 = vmmov 0   ;;  %vm33_vm1 = vcmask 254976   ;;  %v121_v1 = vlaneseq  ;;  %v39_v4 = vld [vmem:[#allocation3] sm:$0xff] }
  0x14   :  { %233 = vmatprep.subr.mxu0 %v302_v0  ;;  %235 = vmatprep.mubr.msk.f32.mxu0 %vm303_vm0, %v302_v0  ;;  %34 = vst.msk [vmem:[#allocation2] sm:$0x3] %vm33_vm1, %v302_v0  ;;  %v304_v2 = vmov 0   ;;  %v35_v5 = vld [vmem:[%s359_s1] sm:$0x1]  ;;  %v119_v6 = vld [vmem:[#allocation3 + $0x8] sm:$0xff] }
  0x15   :  { %238 = vmatprep.subr.mxu1 %v302_v0  ;;  %240 = vmatprep.mubr.msk.f32.mxu1 %vm303_vm0, %v302_v0  ;;  %v122_v3 = vshrl.u32 %v121_v1, 7  ;;  %v36_v7 = vunpack.c.0.s8 %v35_v5  ;;  %v203_v8 = vld [vmem:[%s360_s2] sm:$0x3]  ;;  %vm41_vm2 = vcmask 64512   ;;  %vm116_vm3 = vcmask 253952   ;;  %s305_s1 = smov [#allocation6]  }
  0x16   :  { %250 = vset.pattern.permute.xlu0 %v304_v2  ;;  %234 = vmatpush3.msra.mxu0 %v39_v4  ;;  %s218_s2 = sshll.u32 %s305_s1, 4  ;;  %s219_s2 = int_to_ptr.vmem [resolvable:$true] %s218_s2 }
  0x17   :  { %239 = vmatpush3.msra.mxu1 %v119_v6  ;;  %206 = vperm.xlu0 %250, %v203_v8   ;;  %v37_v9 = vcvt.s32.f32 %v36_v7  ;;  %v123_v10 = vsub.s32 1, %v122_v3  ;;  %s273_s29 = scalar_lea.vmem %s219_s2, 32  ;;  %p278_p9 = scmp.lt.s32.totalorder %s219_s2, %s219_s2 }
  0x18   :  { %p274_p8 = scmp.ne.s32.totalorder %s219_s2, %s273_s29  ;;  %p279_p10 = scmp.lt.s32.totalorder %s273_s29, %s273_s29 }
  0x19   :  { %v38_v11 = vsub.f32 1.0, %v37_v9 }
  0x1a   :  { %p280_p11 = por %p279_p10, %p278_p9 }
  0x1b   :  { %236 = vmatmul.mubr.msk.f32.vlgmr.msra.gmra.mrb[0].mxu0 %vm41_vm2, %v38_v11  ;;  %v124_v12 = vrot.slane %v38_v11, %v123_v10  ;;  %v40_v13 = vld [vmem:[#allocation2] sm:$0x1]  ;;  %v120_v15 = vld [vmem:[#allocation2 + $0x1] sm:$0x1] }
  0x1c   :  { %p281_p12 = pnand %p280_p11, %p274_p8 }
  0x1d   :  { %241 = vmatmul.mubr.msk.f32.vlgmr.msra.gmra.mrb[0].mxu1 %vm41_vm2, %v124_v12 }
  0x96   :  { %v207_v21 = vpop.permute.xlu0 %206 }
  0xee   :  { %v111_v14 = vpop.f32.mrb[0].mxu0 }
  0xef   :  { %v115_v16 = vadd.f32 %v111_v14, %v40_v13  ;;  %v237_v17 = vpop.f32.mrb[1].mxu0 }
  0xf0   :  { %v193_v18 = vpop.f32.mrb[0].mxu1 }
  0xf1   :  { %117 = vst.msk [vmem:[#allocation2] sm:$0x1] %vm116_vm3, %v115_v16  ;;  %v197_v19 = vadd.f32 %v193_v18, %v120_v15  ;;  %v242_v20 = vpop.f32.mrb[1].mxu1 }
  0xf3   :  { %198 = vst.msk [vmem:[#allocation2 + $0x1] sm:$0x1] %vm116_vm3, %v197_v19 }
  0xfa   :  { %v202_v22 = vld [vmem:[#allocation2] sm:$0x3] }
  0xfb   :  { %v209_v23 = vmul.f32 %v207_v21, %v202_v22 }
  0xfd   :  { %211 = vst.msk [vmem:[#allocation6] sm:$0x3] %vm33_vm1, %v209_v23 }
  0xfe   :  { %284 = shalt.err (!%p281_p12)
}
  0xff   :  { %s285_s5 = scalar_lea.hbm %s361_s3, 32 }
 0x100   :  { %p286_p13 = scmp.ne.s32.totalorder %s361_s3, %s285_s5  ;;  %p289_p0 = scmp.lt.u32.totalorder %s285_s5, %s361_s3 }
 0x102   :  { %p291_p1 = pnand %p289_p0, %p286_p13 }
 0x104   :  { %294 = shalt.err (!%p291_p1)
}
 0x105   :  { %221 = dma.vmem_to_hbm [thread:$0]  %s219_s2, 32, %s361_s3, [#allocation5]  }
 0x106   :  { %297 = dma.done.wait [#allocation5], 32  }
 0x107   :  { %298 = vsyncadd [#allocation5], 4294967264 }
 0x108   :  { %225 = vsyncpa [#allocation4], 1 }
 0x109   :  { %226 = vsyncpa [#allocation5], 1 }

</bundles_post_ra>
